<compile_context>
chip_gen: v7x
topology: tpu7x:2x2x1
jax: 0.10.0
libtpu: 0.0.40
codegen_flags: <defaults>
</compile_context>

<pallas_src>
import functools

import jax
import jax.numpy as jnp
import numpy as np
from jax.experimental import pallas as pl
from jax.experimental.pallas import tpu as pltpu


def _partial_stats_kernel(x_ref, out_ref, *, T, T_TILE):
    """Per-time-tile partial statistics.

    out_ref block: f32[1, 4, B, F]
      [0,0] row_sum : sum over the tile's (valid) time samples, per (b, f) row
      [0,1] row_m2  : sum((x - tile_row_mean)^2) over valid time samples
      [0,2] row_max : max over valid time samples
      [0,3] row_min : min over valid time samples
    """
    t = pl.program_id(0)
    x = x_ref[...].astype(jnp.float32)          # (B, F, T_TILE)
    B, F, TT = x.shape

    ragged = (T % T_TILE) != 0                  # static (trace-time) decision
    if ragged:
        # mask lanes past the true end of the time axis (last partial tile)
        time_idx = jax.lax.broadcasted_iota(jnp.int32, x.shape, 2) + t * TT
        valid = time_idx < T
        n_b = jnp.minimum(TT, T - t * TT).astype(jnp.float32)

        xz = jnp.where(valid, x, 0.0)
        row_sum = jnp.sum(xz, axis=2)                           # (B, F)
        row_mean = row_sum / n_b
        d = jnp.where(valid, x - row_mean[:, :, None], 0.0)
        row_m2 = jnp.sum(d * d, axis=2)                         # (B, F)
        row_max = jnp.max(jnp.where(valid, x, -jnp.inf), axis=2)
        row_min = jnp.min(jnp.where(valid, x, jnp.inf), axis=2)
    else:
        row_sum = jnp.sum(x, axis=2)                            # (B, F)
        row_mean = row_sum * (1.0 / TT)
        d = x - row_mean[:, :, None]
        row_m2 = jnp.sum(d * d, axis=2)                         # (B, F)
        row_max = jnp.max(x, axis=2)
        row_min = jnp.min(x, axis=2)

    out_ref[0, 0] = row_sum
    out_ref[0, 1] = row_m2
    out_ref[0, 2] = row_max
    out_ref[0, 3] = row_min


def _pick_time_tile(B, F, T, budget_bytes=4 * 1024 * 1024):
    """Time-tile: multiple of 128 lanes, >=512 when possible, <= ~4 MiB/block
    so double-buffering stays well under every generation's scoped VMEM
    (16 MiB v5e, 32 MiB v6e/v7x defaults; 64 MiB physical on v7x)."""
    if T <= 512:
        return T                                   # block == full dim, legal
    max_t = budget_bytes // (B * F * 4)
    t_tile = min(2048, max(512, (max_t // 128) * 128))
    return T if t_tile >= T else t_tile


def quality_metrics(mel_spec):
    """JAX/Pallas equivalent of QualityMetricsCalculator.forward."""
    B, F, T = mel_spec.shape
    T_TILE = _pick_time_tile(B, F, T)
    num_tb = int(pl.cdiv(T, T_TILE))

    kernel = functools.partial(_partial_stats_kernel, T=T, T_TILE=T_TILE)
    partials = pl.pallas_call(
        kernel,
        out_shape=jax.ShapeDtypeStruct((num_tb, 4, B, F), jnp.float32),
        grid=(num_tb,),
        in_specs=[pl.BlockSpec((B, F, T_TILE), lambda t: (0, 0, t))],
        out_specs=pl.BlockSpec((1, 4, B, F), lambda t: (t, 0, 0, 0)),
        compiler_params=pltpu.CompilerParams(
            dimension_semantics=("parallel",),
            vmem_limit_bytes=32 * 1024 * 1024,
        ),
    )(mel_spec)

    row_sum_b = partials[:, 0]      # (num_tb, B, F)
    row_m2_b = partials[:, 1]
    row_max_b = partials[:, 2]
    row_min_b = partials[:, 3]

    # per-block valid sample counts along time (static shapes, tiny arrays)
    counts = jnp.clip(
        T - jnp.arange(num_tb, dtype=jnp.int32) * T_TILE, 0, T_TILE
    ).astype(jnp.float32)                                       # (num_tb,)

    # ---- combine partial stats (all O(num_tb * B * F), plain JAX glue) ----
    row_sum = jnp.sum(row_sum_b, axis=0)                        # (B, F)
    row_mean = row_sum / T
    block_mean = row_sum_b / counts[:, None, None]
    # group-wise variance decomposition (exact, numerically stable)
    row_m2 = (jnp.sum(row_m2_b, axis=0)
              + jnp.sum(counts[:, None, None] * (block_mean - row_mean) ** 2,
                        axis=0))
    var = row_m2 / (T - 1)          # unbiased, matches torch.var default
    mean_var = jnp.mean(var)

    sum_all = jnp.sum(row_sum)
    sum_high = jnp.sum(row_sum[:, F // 2:])
    max_all = jnp.max(row_max_b)
    min_all = jnp.min(row_min_b)

    n_total = B * F * T
    n_high = B * (F - F // 2) * T

    # spectral clarity: mean(high half) / (mean(all) + eps), clamp [0, 1]
    mean_all = sum_all / n_total
    mean_high = sum_high / n_high
    spectral_clarity = jnp.clip(mean_high / (mean_all + 1e-8), 0.0, 1.0)

    # noise level: 10th percentile / (max + eps), clamp [0, 1]
    # TODO(synk): exact global quantile kept in plain JAX (sort); dominates
    # wall-clock for large inputs — histogram approximation would be faster
    # but not bit-identical to torch.quantile.
    q10 = jnp.quantile(mel_spec.reshape(-1).astype(jnp.float32), 0.1)
    noise_level = jnp.clip(q10 / (max_all + 1e-8), 0.0, 1.0)

    # spectral stability: 1 / (1 + mean temporal variance), clamp [0, 1]
    spectral_stability = jnp.clip(1.0 / (1.0 + mean_var), 0.0, 1.0)

    # dynamic range: 20*log10(max / (min + eps)) / 60, clamp [0, 1]
    range_db = 20.0 * jnp.log10(max_all / (min_all + 1e-8))
    dynamic_range = jnp.clip(range_db / 60.0, 0.0, 1.0)

    overall_quality = (spectral_clarity + (1.0 - noise_level)
                       + spectral_stability + dynamic_range) / 4.0

    return {
        'spectral_clarity': spectral_clarity,
        'noise_level': noise_level,
        'spectral_stability': spectral_stability,
        'dynamic_range': dynamic_range,
        'overall_quality': overall_quality,
    }


def _reference(mel_spec):
    """Pure numpy reference mirroring the PyTorch module semantics."""
    x = np.asarray(mel_spec, dtype=np.float32)
    B, F, T = x.shape
    clarity = float(np.clip(x[:, F // 2:, :].mean() / (x.mean() + 1e-8), 0, 1))
    q10 = float(np.quantile(x.reshape(-1), 0.1))
    noise = float(np.clip(q10 / (x.max() + 1e-8), 0, 1))
    var = x.var(axis=2, ddof=1).mean()
    stability = float(np.clip(1.0 / (1.0 + var), 0, 1))
    dyn = float(np.clip(20.0 * np.log10(x.max() / (x.min() + 1e-8)) / 60.0, 0, 1))
    overall = (clarity + (1.0 - noise) + stability + dyn) / 4.0
    return {
        'spectral_clarity': clarity,
        'noise_level': noise,
        'spectral_stability': stability,
        'dynamic_range': dyn,
        'overall_quality': overall,
    }


def _check(mel):
    metrics = quality_metrics(mel)
    metrics = jax.block_until_ready(metrics)
    metrics_host = {k: float(v) for k, v in metrics.items()}
    ref = _reference(mel)
    for k in ref:
        np.testing.assert_allclose(metrics_host[k], ref[k], rtol=1e-4, atol=1e-5)


if __name__ == "__main__":
    key = jax.random.PRNGKey(0)

    # primary case: positive mel-spectrogram-like magnitudes
    # (batch=2, n_mels=16, time=128) — single time tile
    mel = jnp.exp(0.5 * jax.random.normal(key, (2, 16, 128), dtype=jnp.float32))
    _check(mel)

    # ragged multi-tile case: exercises the time grid + last-tile masking
    # (batch=1, n_mels=8, time=2304 -> tiles of 2048 + 256 valid lanes)
    key2 = jax.random.PRNGKey(1)
    mel2 = jnp.exp(0.5 * jax.random.normal(key2, (1, 8, 2304), dtype=jnp.float32))
    _check(mel2)

    print("KERNEL_OK")
</pallas_src>

<mosaic_0001>
module attributes {stable_mosaic.version = 11 : i64} {
  func.func @_partial_stats_kernel(%arg0: i32, %arg1: memref<2x16x128xf32, #tpu.memory_space<vmem>>, %arg2: memref<1x4x2x16xf32, #tpu.memory_space<vmem>>) attributes {dimension_semantics = [#tpu.dimension_semantics<parallel>], iteration_bounds = array<i64: 1>, scalar_prefetch = 0 : i64, scratch_operands = 0 : i64, tpu.core_type = #tpu.core_type<tc>, window_params = [{transform_indices = @transform_0, window_bounds = array<i64: 2, 16, 128>}, {transform_indices = @transform_1, window_bounds = array<i64: 1, 4, 2, 16>}]} {
    %c0 = arith.constant 0 : index
    %c0_0 = arith.constant 0 : index
    %c0_1 = arith.constant 0 : index
    %0 = vector.load %arg1[%c0, %c0_0, %c0_1] : memref<2x16x128xf32, #tpu.memory_space<vmem>>, vector<2x16x128xf32>
    %cst = arith.constant dense<0.000000e+00> : vector<2x16xf32>
    %1 = vector.multi_reduction <add>, %0, %cst [2] : vector<2x16x128xf32> to vector<2x16xf32>
    %cst_2 = arith.constant 7.812500e-03 : f32
    %2 = vector.broadcast %cst_2 : f32 to vector<2x16xf32>
    %3 = arith.mulf %1, %2 : vector<2x16xf32>
    %4 = vector.shape_cast %3 : vector<2x16xf32> to vector<2x16x1xf32>
    %5 = vector.broadcast %4 : vector<2x16x1xf32> to vector<2x16x128xf32>
    %6 = arith.subf %0, %5 : vector<2x16x128xf32>
    %7 = arith.mulf %6, %6 : vector<2x16x128xf32>
    %cst_3 = arith.constant dense<0.000000e+00> : vector<2x16xf32>
    %8 = vector.multi_reduction <add>, %7, %cst_3 [2] : vector<2x16x128xf32> to vector<2x16xf32>
    %cst_4 = arith.constant dense<0xFF800000> : vector<2x16xf32>
    %9 = vector.multi_reduction <maximumf>, %0, %cst_4 [2] : vector<2x16x128xf32> to vector<2x16xf32>
    %cst_5 = arith.constant dense<0x7F800000> : vector<2x16xf32>
    %10 = vector.multi_reduction <minimumf>, %0, %cst_5 [2] : vector<2x16x128xf32> to vector<2x16xf32>
    %c0_6 = arith.constant 0 : index
    %c0_7 = arith.constant 0 : index
    %c0_8 = arith.constant 0 : index
    %c0_9 = arith.constant 0 : index
    %11 = vector.load %arg2[%c0_6, %c0_7, %c0_8, %c0_9] : memref<1x4x2x16xf32, #tpu.memory_space<vmem>>, vector<1x1x2x16xf32>
    %12 = vector.shape_cast %11 : vector<1x1x2x16xf32> to vector<2x16xf32>
    %13 = vector.shape_cast %1 : vector<2x16xf32> to vector<1x1x2x16xf32>
    tpu.vector_store %arg2[%c0_6, %c0_7, %c0_8, %c0_9], %13 {strides = array<i32>} : memref<1x4x2x16xf32, #tpu.memory_space<vmem>>, vector<1x1x2x16xf32>,
    %c0_10 = arith.constant 0 : index
    %c1 = arith.constant 1 : index
    %c0_11 = arith.constant 0 : index
    %c0_12 = arith.constant 0 : index
    %14 = vector.load %arg2[%c0_10, %c1, %c0_11, %c0_12] : memref<1x4x2x16xf32, #tpu.memory_space<vmem>>, vector<1x1x2x16xf32>
    %15 = vector.shape_cast %14 : vector<1x1x2x16xf32> to vector<2x16xf32>
    %16 = vector.shape_cast %8 : vector<2x16xf32> to vector<1x1x2x16xf32>
    tpu.vector_store %arg2[%c0_10, %c1, %c0_11, %c0_12], %16 {strides = array<i32>} : memref<1x4x2x16xf32, #tpu.memory_space<vmem>>, vector<1x1x2x16xf32>,
    %c0_13 = arith.constant 0 : index
    %c2 = arith.constant 2 : index
    %c0_14 = arith.constant 0 : index
    %c0_15 = arith.constant 0 : index
    %17 = vector.load %arg2[%c0_13, %c2, %c0_14, %c0_15] : memref<1x4x2x16xf32, #tpu.memory_space<vmem>>, vector<1x1x2x16xf32>
    %18 = vector.shape_cast %17 : vector<1x1x2x16xf32> to vector<2x16xf32>
    %19 = vector.shape_cast %9 : vector<2x16xf32> to vector<1x1x2x16xf32>
    tpu.vector_store %arg2[%c0_13, %c2, %c0_14, %c0_15], %19 {strides = array<i32>} : memref<1x4x2x16xf32, #tpu.memory_space<vmem>>, vector<1x1x2x16xf32>,
    %c0_16 = arith.constant 0 : index
    %c3 = arith.constant 3 : index
    %c0_17 = arith.constant 0 : index
    %c0_18 = arith.constant 0 : index
    %20 = vector.load %arg2[%c0_16, %c3, %c0_17, %c0_18] : memref<1x4x2x16xf32, #tpu.memory_space<vmem>>, vector<1x1x2x16xf32>
    %21 = vector.shape_cast %20 : vector<1x1x2x16xf32> to vector<2x16xf32>
    %22 = vector.shape_cast %10 : vector<2x16xf32> to vector<1x1x2x16xf32>
    tpu.vector_store %arg2[%c0_16, %c3, %c0_17, %c0_18], %22 {strides = array<i32>} : memref<1x4x2x16xf32, #tpu.memory_space<vmem>>, vector<1x1x2x16xf32>,
    return
  }
  func.func @transform_0(%arg0: i32) -> (i32, i32, i32) {
    %c0_i32 = arith.constant 0 : i32
    %c0_i32_0 = arith.constant 0 : i32
    %c0_i32_1 = arith.constant 0 : i32
    return %c0_i32, %c0_i32_0, %arg0 : i32, i32, i32
  }
  func.func @transform_1(%arg0: i32) -> (i32, i32, i32, i32) {
    %c0_i32 = arith.constant 0 : i32
    %c0_i32_0 = arith.constant 0 : i32
    %c0_i32_1 = arith.constant 0 : i32
    %c0_i32_2 = arith.constant 0 : i32
    return %arg0, %c0_i32, %c0_i32_0, %c0_i32_1 : i32, i32, i32, i32
  }
}

</mosaic_0001>

<bundles_post_ra>
// kernel: tpu_custom_call.1
= control target key start
LH: loop header
LB: loop body
LE: loop exit
PB: predicated region body
PF: predicated region fallthrough
CT: control target
= control target key end

     0   :  { %6 = vsyncpa [#allocation3], 0  ;;  %s327_s0 = inlined_call_operand.hbm [shape: f32[2,16,128], index: 0, kind: input, shape index: {}]   ;;  %s328_s1 = inlined_call_operand.hbm [shape: f32[1,4,2,16], index: 1, kind: output, shape index: {}]  }
   0x1   :  { %7 = vsyncpa [#allocation4], 0  ;;  %s251_s6 = smov [#allocation2]   ;;  %s203_s10 = scalar_lea.hbm %s327_s0, 512 }
   0x2   :  { %s13_s7 = sshll.u32 %s251_s6, 4  ;;  %p204_p0 = scmp.ne.s32.totalorder %s327_s0, %s203_s10  ;;  %s14_s7 = int_to_ptr.vmem [resolvable:$true] %s13_s7 }
   0x3   :  { %p207_p1 = scmp.lt.u32.totalorder %s203_s10, %s327_s0 }
   0x5   :  { %p209_p2 = pnand %p207_p1, %p204_p0 }
   0x7   :  { %212 = shalt.err (!%p209_p2)
}
   0x8   :  { %s213_s15 = scalar_lea.vmem %s14_s7, 512  ;;  %p218_p4 = scmp.lt.s32.totalorder %s14_s7, %s14_s7 }
   0x9   :  { %p214_p3 = scmp.ne.s32.totalorder %s14_s7, %s213_s15  ;;  %p219_p5 = scmp.lt.s32.totalorder %s213_s15, %s213_s15 }
   0xb   :  { %p220_p6 = por %p219_p5, %p218_p4 }
   0xd   :  { %p221_p7 = pnand %p220_p6, %p214_p3 }
   0xf   :  { %224 = shalt.err (!%p221_p7)
}
  0x10   :  { %s252_s16 = smov 128   ;;  %s253_s17 = smov 8  }
  0x11   :  { %19 = dma.hbm_to_vmem [thread:$0]  %s327_s0, 512, %s14_s7, [#allocation3], %s252_s16, %s252_s16, %s253_s17  }
  0x12   :  { %247 = dma.done.wait [#allocation3], 512  }
  0x13   :  { %248 = vsyncadd [#allocation3], 4294966784  ;;  %v25_v0 = vld [vmem:[#allocation2 + $0x10] sm:$0xff]  ;;  %v23_v1 = vld [vmem:[#allocation2] sm:$0xff]  ;;  %v75_v4 = vlaneseq  ;;  %vm86_vm0 = vcmask 130112   ;;  %vm97_vm1 = vcmask 1041409  }
  0x14   :  { %31 = vadd.xlane.f32.xlu1 %v25_v0  ;;  %27 = vadd.xlane.f32.xlu0 %v23_v1  ;;  %v26_v2 = vld [vmem:[#allocation2 + $0x18] sm:$0xff]  ;;  %v24_v3 = vld [vmem:[#allocation2 + $0x8] sm:$0xff]  ;;  %vm100_vm2 = vcmask 123904   ;;  %s254_s0 = smov [#allocation5]  }
  0x15   :  { %v76_v5 = vand.u32 127, %v75_v4  ;;  %v78_v6 = vshrl.u32 %v75_v4, 7  ;;  %s185_s20 = sshll.u32 %s254_s0, 4  ;;  %s186_s20 = int_to_ptr.vmem [resolvable:$true] %s185_s20 }
  0x16   :  { %s225_s21 = scalar_lea.vmem %s186_s20, 128  ;;  %p230_p9 = scmp.lt.s32.totalorder %s186_s20, %s186_s20 }
  0x17   :  { %v81_v7 = vadd.s32 4294967288, %v76_v5  ;;  %v279_v8 = vsub.s32 %v76_v5, %v78_v6  ;;  %p226_p8 = scmp.ne.s32.totalorder %s186_s20, %s225_s21  ;;  %p231_p10 = scmp.lt.s32.totalorder %s225_s21, %s225_s21 }
  0x18   :  { %33 = vadd.xlane.f32.xlu1 %v26_v2  ;;  %29 = vadd.xlane.f32.xlu0 %v24_v3 }
  0x19   :  { %v281_v13 = vsub.s32 %v81_v7, %v78_v6  ;;  %p232_p11 = por %p231_p10, %p230_p9 }
  0x1b   :  { %p233_p12 = pnand %p232_p11, %p226_p8 }
  0x1c   :  { %57 = vmax.xlane.f32.xlu1 %v24_v3  ;;  %55 = vmax.xlane.f32.xlu0 %v23_v1 }
  0x20   :  { %61 = vmax.xlane.f32.xlu1 %v26_v2  ;;  %59 = vmax.xlane.f32.xlu0 %v25_v0 }
  0x24   :  { %63 = vmin.xlane.f32.xlu0 %v23_v1  ;;  %65 = vmin.xlane.f32.xlu1 %v24_v3 }
  0xa1   :  { %v32_v9 = vpop.xlane.xlu1 %31  ;;  %v28_v10 = vpop.xlane.xlu0 %27 }
  0xa2   :  { %v37_v11 = vmul.f32 0.0078125, %v32_v9  ;;  %v35_v12 = vmul.f32 0.0078125, %v28_v10  ;;  %v91_v14 = vrot.slane %v32_v9, %v279_v8  ;;  %v80_v16 = vrot.slane %v28_v10, %v279_v8 }
  0xa4   :  { %v39_v15 = vsub.f32 %v23_v1, %v35_v12  ;;  %v41_v19 = vsub.f32 %v25_v0, %v37_v11 }
  0xa5   :  { %v34_v17 = vpop.xlane.xlu1 %33  ;;  %v30_v18 = vpop.xlane.xlu0 %29 }
  0xa6   :  { %v38_v20 = vmul.f32 0.0078125, %v34_v17  ;;  %v95_v21 = vrot.slane %v34_v17, %v281_v13  ;;  %v36_v22 = vmul.f32 0.0078125, %v30_v18  ;;  %v85_v23 = vrot.slane %v30_v18, %v281_v13 }
  0xa7   :  { %v43_v24 = vmul.f32 %v39_v15, %v39_v15  ;;  %v45_v30 = vmul.f32 %v41_v19, %v41_v19 }
  0xa8   :  { %v96_v25 = vsel %vm86_vm0, %v95_v21, %v91_v14  ;;  %v87_v26 = vsel %vm86_vm0, %v85_v23, %v80_v16  ;;  %v40_v27 = vsub.f32 %v24_v3, %v36_v22  ;;  %v42_v28 = vsub.f32 %v26_v2, %v38_v20 }
  0xa9   :  { %v98_v29 = vsel %vm97_vm1, %v96_v25, %v87_v26  ;;  %47 = vadd.xlane.f32.xlu0 %v43_v24  ;;  %v58_v31 = vpop.xlane.xlu1 %57  ;;  %v56_v32 = vpop.xlane.xlu0 %55 }
  0xaa   :  { %101 = vst.msk [vmem:[#allocation5] sm:$0x3] %vm100_vm2, %v98_v29  ;;  %v44_v33 = vmul.f32 %v40_v27, %v40_v27  ;;  %v139_v34 = vrot.slane %v58_v31, %v281_v13  ;;  %v135_v35 = vrot.slane %v56_v32, %v279_v8  ;;  %v46_v36 = vmul.f32 %v42_v28, %v42_v28 }
  0xac   :  { %49 = vadd.xlane.f32.xlu1 %v44_v33  ;;  %v140_v39 = vsel %vm86_vm0, %v139_v34, %v135_v35 }
  0xad   :  { %51 = vadd.xlane.f32.xlu0 %v45_v30  ;;  %v62_v37 = vpop.xlane.xlu1 %61  ;;  %v60_v38 = vpop.xlane.xlu0 %59 }
  0xae   :  { %v148_v40 = vrot.slane %v62_v37, %v281_v13  ;;  %v144_v41 = vrot.slane %v60_v38, %v279_v8 }
  0xb0   :  { %53 = vadd.xlane.f32.xlu1 %v46_v36  ;;  %v149_v42 = vsel %vm86_vm0, %v148_v40, %v144_v41 }
  0xb1   :  { %67 = vmin.xlane.f32.xlu0 %v25_v0  ;;  %v150_v43 = vsel %vm97_vm1, %v149_v42, %v140_v39  ;;  %v64_v44 = vpop.xlane.xlu0 %63  ;;  %v66_v45 = vpop.xlane.xlu1 %65 }
  0xb2   :  { %153 = vst.msk [vmem:[#allocation5 + $0x4] sm:$0x3] %vm100_vm2, %v150_v43  ;;  %v161_v55 = vrot.slane %v64_v44, %v279_v8  ;;  %v165_v56 = vrot.slane %v66_v45, %v281_v13 }
  0xb4   :  { %69 = vmin.xlane.f32.xlu1 %v26_v2  ;;  %v166_v63 = vsel %vm86_vm0, %v165_v56, %v161_v55 }
 0x136   :  { %v48_v46 = vpop.xlane.xlu0 %47 }
 0x137   :  { %v109_v51 = vrot.slane %v48_v46, %v279_v8 }
 0x139   :  { %v50_v47 = vpop.xlane.xlu1 %49 }
 0x13a   :  { %v52_v48 = vpop.xlane.xlu0 %51  ;;  %v113_v49 = vrot.slane %v50_v47, %v281_v13 }
 0x13b   :  { %v118_v52 = vrot.slane %v52_v48, %v279_v8 }
 0x13c   :  { %v114_v57 = vsel %vm86_vm0, %v113_v49, %v109_v51 }
 0x13d   :  { %v54_v50 = vpop.xlane.xlu1 %53 }
 0x13e   :  { %v122_v53 = vrot.slane %v54_v50, %v281_v13  ;;  %v68_v54 = vpop.xlane.xlu0 %67 }
 0x13f   :  { %v170_v59 = vrot.slane %v68_v54, %v279_v8 }
 0x140   :  { %v123_v58 = vsel %vm86_vm0, %v122_v53, %v118_v52 }
 0x141   :  { %v124_v60 = vsel %vm97_vm1, %v123_v58, %v114_v57  ;;  %v70_v61 = vpop.xlane.xlu1 %69 }
 0x142   :  { %127 = vst.msk [vmem:[#allocation5 + $0x2] sm:$0x3] %vm100_vm2, %v124_v60  ;;  %v174_v62 = vrot.slane %v70_v61, %v281_v13 }
 0x144   :  { %v175_v0 = vsel %vm86_vm0, %v174_v62, %v170_v59 }
 0x145   :  { %v176_v1 = vsel %vm97_vm1, %v175_v0, %v166_v63 }
 0x146   :  { %179 = vst.msk [vmem:[#allocation5 + $0x6] sm:$0x3] %vm100_vm2, %v176_v1 }
 0x147   :  { %236 = shalt.err (!%p233_p12)
}
 0x148   :  { %s237_s24 = scalar_lea.hbm %s328_s1, 128 }
 0x149   :  { %p238_p13 = scmp.ne.s32.totalorder %s328_s1, %s237_s24  ;;  %p241_p0 = scmp.lt.u32.totalorder %s237_s24, %s328_s1 }
 0x14b   :  { %p243_p1 = pnand %p241_p0, %p238_p13 }
 0x14d   :  { %246 = shalt.err (!%p243_p1)
}
 0x14e   :  { %s255_s29 = smov 32   ;;  %s256_s30 = smov 2  }
 0x14f   :  { %191 = dma.vmem_to_hbm [thread:$0]  %s186_s20, 128, %s328_s1, [#allocation4], %s255_s29, %s255_s29, %s256_s30  }
 0x150   :  { %249 = dma.done.wait [#allocation4], 128  }
 0x151   :  { %250 = vsyncadd [#allocation4], 4294967168 }
 0x152   :  { %195 = vsyncpa [#allocation3], 1 }
 0x153   :  { %196 = vsyncpa [#allocation4], 1 }

</bundles_post_ra>
